<compile_context>
chip_gen: v5e
topology: v5e:2x2
jax: 0.10.0
libtpu: 0.0.40
codegen_flags: <defaults>
</compile_context>

<pallas_src>
import jax
import jax.numpy as jnp
from jax import lax
from jax.experimental import pallas as pl
from jax.experimental.pallas import tpu as pltpu


def _round_up(n, m):
    return ((n + m - 1) // m) * m


def _projector_kernel(x_ref, w2_ref, w1t_ref, bias_ref, o_ref, yt_ref):
    # x_ref   : (Bt, S, D)    x.dtype   natural layout, no pre-transpose
    # w2_ref  : (Ep, D)       f32       rows E..Ep zero-padded
    # w1t_ref : (S, Pp)       f32       cols P..Pp zero-padded
    # bias_ref: (Bt*Ep, Pp)   f32       folded bias, pre-tiled over batch tile
    # o_ref   : (Bt*Ep, Pp)   x.dtype   batch-stacked out^T (lane-dense)
    # yt_ref  : (Bt*Ep, S)    f32       VMEM scratch for staged first matmul
    bt = x_ref.shape[0]
    ep = w2_ref.shape[0]
    w2 = w2_ref[...]                                   # hoisted, resident

    def stage(b, carry):
        xb = x_ref[b].astype(jnp.float32)              # (S, D)
        # yt = W2 @ x[b]^T, contracting d_model on both sides (trans-B form;
        # no in-kernel transpose of x).
        yt = lax.dot_general(
            w2, xb,
            dimension_numbers=(((1,), (1,)), ((), ())),
            preferred_element_type=jnp.float32)        # (Ep, S)
        row0 = pl.multiple_of(b * ep, 8)               # ep % 8 == 0
        yt_ref[pl.ds(row0, ep), :] = yt
        return carry

    lax.fori_loop(0, bt, stage, 0, unroll=min(4, bt))

    # One batch-stacked second matmul: MXU M-dim = Bt*Ep, lane dim = Pp.
    out = jnp.dot(yt_ref[...], w1t_ref[...],
                  preferred_element_type=jnp.float32)  # (Bt*Ep, Pp)
    o_ref[...] = (out + bias_ref[...]).astype(o_ref.dtype)


def _vmem_capacity_bytes():
    try:
        info = pltpu.get_tpu_info()
        cap = int(getattr(info, "vmem_capacity_bytes", 0) or 0)
        if cap > 0:
            return cap
    except Exception:
        pass
    return 64 << 20  # conservative fallback: v7x physical VMEM per core


def _pick_batch_tile(B, S, D, Ep, Pp, x_itemsize, out_itemsize, vmem_cap):
    budget = int(vmem_cap * 0.55)            # ~35 MiB (v7x) / ~70 MiB (v5e/v6e)
    resident = 2 * 4 * (Ep * D + S * Pp)     # double-buffered f32 weight blocks
    per_batch = (2 * S * D * x_itemsize      # x block, double-buffered
                 + 2 * Ep * Pp * out_itemsize  # out block, double-buffered
                 + 2 * Ep * Pp * 4           # tiled bias block, double-buffered
                 + Ep * S * 4)               # yt scratch (single)
    bt = max(1, (budget - resident) // max(per_batch, 1))
    bt = min(bt, B)
    if B >= 2:
        # Keep >=2 grid steps: both v7x TensorCores get work under
        # dimension_semantics=("parallel",) and the pipeline can overlap DMA.
        bt = min(bt, pl.cdiv(B, 2))
    return int(max(1, bt))


def projector_forward(x, w1, b1, w2, b2, *, batch_tile=None):
    """x: (B, S, D). w1: (P, S), b1: (P,), w2: (E, D), b2: (E,) (PyTorch layout).
    Returns (B, P, E) in x.dtype, matching Projector.forward."""
    B, S, D = x.shape
    P, S2 = w1.shape
    E, D2 = w2.shape
    assert S2 == S and D2 == D

    Ep = _round_up(E, 8)      # sublane alignment of the stacked M groups
    Pp = _round_up(P, 128)    # lane-dense output stores

    f32 = jnp.float32
    w2p = jnp.zeros((Ep, D), f32).at[:E, :].set(w2.astype(f32))
    w1tp = jnp.zeros((S, Pp), f32).at[:, :P].set(jnp.transpose(w1).astype(f32))
    # Folded bias: bias^T[e,p] = rowsum(W2)[e] * b1[p] + b2[e]  (f32, consistent
    # with the f32 matmul path).
    bias = (jnp.sum(w2.astype(f32), axis=1)[:, None] * b1.astype(f32)[None, :]
            + b2.astype(f32)[:, None])                                 # (E, P)
    biasp = jnp.zeros((Ep, Pp), f32).at[:E, :P].set(bias)

    vmem_cap = _vmem_capacity_bytes()
    Bt = batch_tile if batch_tile is not None else _pick_batch_tile(
        B, S, D, Ep, Pp, x.dtype.itemsize, x.dtype.itemsize, vmem_cap)
    Bt = int(max(1, min(Bt, B)))

    bias_tiled = jnp.tile(biasp, (Bt, 1))                              # (Bt*Ep, Pp)

    out2d = pl.pallas_call(
        _projector_kernel,
        out_shape=jax.ShapeDtypeStruct((B * Ep, Pp), x.dtype),
        grid_spec=pltpu.PrefetchScalarGridSpec(
            num_scalar_prefetch=0,
            grid=(pl.cdiv(B, Bt),),
            in_specs=[
                pl.BlockSpec((Bt, S, D), lambda i: (i, 0, 0)),      # x batch tile
                pl.BlockSpec((Ep, D), lambda i: (0, 0)),            # W2   (resident)
                pl.BlockSpec((S, Pp), lambda i: (0, 0)),            # W1^T (resident)
                pl.BlockSpec((Bt * Ep, Pp), lambda i: (0, 0)),      # bias (resident)
            ],
            out_specs=pl.BlockSpec((Bt * Ep, Pp), lambda i: (i, 0)),
            scratch_shapes=[pltpu.VMEM((Bt * Ep, S), jnp.float32)],
        ),
        compiler_params=pltpu.CompilerParams(
            dimension_semantics=("parallel",),
            vmem_limit_bytes=int(vmem_cap * 0.75),
        ),
    )(x, w2p, w1tp, bias_tiled)

    # (B*Ep, Pp) -> (B, E, P) -> (B, P, E).  E (enc_in) is small, so the final
    # transpose stays in the wrapper; for E >= 128 one would emit (B, P, E)
    # directly from the kernel instead.
    out_t = out2d.reshape(B, Ep, Pp)[:, :E, :P]
    return jnp.transpose(out_t, (0, 2, 1))


def _reference(x, w1, b1, w2, b2):
    # Pure-JAX f32 reference mirroring the PyTorch forward exactly.
    xt = jnp.transpose(x, (0, 2, 1))                 # (B, D, S)
    h = jnp.einsum("bds,ps->bdp", xt, w1) + b1       # (B, D, P)
    h = jnp.transpose(h, (0, 2, 1))                  # (B, P, D)
    return jnp.einsum("bpd,ed->bpe", h, w2) + b2     # (B, P, E)


if __name__ == "__main__":
    # Small shapes consistent with the module.
    B, seq_len, pred_len, new_d_model, enc_in = 2, 8, 16, 32, 8

    key = jax.random.PRNGKey(0)
    kx, k1w, k1b, k2w, k2b = jax.random.split(key, 5)

    x = jax.random.normal(kx, (B, seq_len, new_d_model), dtype=jnp.float32)

    # Deterministic PyTorch-style init: U(-1/sqrt(fan_in), 1/sqrt(fan_in)).
    bound1 = 1.0 / (seq_len ** 0.5)
    w1 = jax.random.uniform(k1w, (pred_len, seq_len), jnp.float32, -bound1, bound1)
    b1 = jax.random.uniform(k1b, (pred_len,), jnp.float32, -bound1, bound1)

    bound2 = 1.0 / (new_d_model ** 0.5)
    w2 = jax.random.uniform(k2w, (enc_in, new_d_model), jnp.float32, -bound2, bound2)
    b2 = jax.random.uniform(k2b, (enc_in,), jnp.float32, -bound2, bound2)

    out = projector_forward(x, w1, b1, w2, b2)
    out = jax.block_until_ready(out)

    ref = _reference(x, w1, b1, w2, b2)
    assert out.shape == (B, pred_len, enc_in), out.shape
    # f32 in-kernel compute; tolerance covers contraction reassociation and
    # possible MXU multi-pass f32 differences across TPU generations.
    max_err = float(jnp.max(jnp.abs(out - ref)))
    assert jnp.allclose(out, ref, atol=1e-2, rtol=1e-2), max_err

    print("KERNEL_OK")
</pallas_src>

<mosaic_0001>
module attributes {stable_mosaic.version = 11 : i64} {
  func.func @_projector_kernel(%arg0: i32, %arg1: memref<1x8x32xf32, #tpu.memory_space<vmem>>, %arg2: memref<8x32xf32, #tpu.memory_space<vmem>>, %arg3: memref<8x128xf32, #tpu.memory_space<vmem>>, %arg4: memref<8x128xf32, #tpu.memory_space<vmem>>, %arg5: memref<8x128xf32, #tpu.memory_space<vmem>>, %arg6: memref<8x8xf32, #tpu.memory_space<vmem>>) attributes {dimension_semantics = [#tpu.dimension_semantics<parallel>], iteration_bounds = array<i64: 2>, scalar_prefetch = 0 : i64, scratch_operands = 1 : i64, tpu.core_type = #tpu.core_type<tc>, window_params = [{transform_indices = @transform_0, window_bounds = array<i64: 1, 8, 32>}, {pipeline_mode = #tpu.pipeline_mode<synchronous>, transform_indices = @transform_1, window_bounds = array<i64: 8, 32>}, {pipeline_mode = #tpu.pipeline_mode<synchronous>, transform_indices = @transform_2, window_bounds = array<i64: 8, 128>}, {pipeline_mode = #tpu.pipeline_mode<synchronous>, transform_indices = @transform_3, window_bounds = array<i64: 8, 128>}, {transform_indices = @transform_4, window_bounds = array<i64: 8, 128>}]} {
    %c0 = arith.constant 0 : index
    %c0_0 = arith.constant 0 : index
    %0 = vector.load %arg2[%c0, %c0_0] : memref<8x32xf32, #tpu.memory_space<vmem>>, vector<8x32xf32>
    %c0_i32 = arith.constant 0 : i32
    %1 = arith.index_cast %c0_i32 : i32 to index
    %c0_1 = arith.constant 0 : index
    %c0_2 = arith.constant 0 : index
    %2 = vector.load %arg1[%1, %c0_1, %c0_2] : memref<1x8x32xf32, #tpu.memory_space<vmem>>, vector<1x8x32xf32>
    %3 = vector.shape_cast %2 : vector<1x8x32xf32> to vector<8x32xf32>
    %cst = arith.constant dense<0.000000e+00> : vector<8x8xf32>
    %4 = tpu.matmul %0, %3, %cst {dimension_numbers = #tpu.dot_dimension_numbers<[1], [1], [0], [0], [0, 0, 1, 0], [], []>} : vector<8x32xf32>, vector<8x32xf32>, vector<8x8xf32> -> vector<8x8xf32>
    %c8_i32 = arith.constant 8 : i32
    %5 = arith.muli %c0_i32, %c8_i32 : i32
    %6 = tpu.assume_multiple %5, 8 : i32
    %7 = arith.index_cast %6 : i32 to index
    %c0_3 = arith.constant 0 : index
    %8 = vector.load %arg6[%7, %c0_3] : memref<8x8xf32, #tpu.memory_space<vmem>>, vector<8x8xf32>
    tpu.vector_store %arg6[%7, %c0_3], %4 {strides = array<i32>} : memref<8x8xf32, #tpu.memory_space<vmem>>, vector<8x8xf32>,
    %c1_i32 = arith.constant 1 : i32
    %c0_4 = arith.constant 0 : index
    %c0_5 = arith.constant 0 : index
    %9 = vector.load %arg6[%c0_4, %c0_5] : memref<8x8xf32, #tpu.memory_space<vmem>>, vector<8x8xf32>
    %c0_6 = arith.constant 0 : index
    %c0_7 = arith.constant 0 : index
    %10 = vector.load %arg3[%c0_6, %c0_7] : memref<8x128xf32, #tpu.memory_space<vmem>>, vector<8x128xf32>
    %cst_8 = arith.constant dense<0.000000e+00> : vector<8x128xf32>
    %11 = tpu.matmul %9, %10, %cst_8 {dimension_numbers = #tpu.dot_dimension_numbers<[1], [0], [0], [1], [0, 0, 1, 1], [], []>} : vector<8x8xf32>, vector<8x128xf32>, vector<8x128xf32> -> vector<8x128xf32>
    %c0_9 = arith.constant 0 : index
    %c0_10 = arith.constant 0 : index
    %12 = vector.load %arg4[%c0_9, %c0_10] : memref<8x128xf32, #tpu.memory_space<vmem>>, vector<8x128xf32>
    %13 = arith.addf %11, %12 : vector<8x128xf32>
    %c0_11 = arith.constant 0 : index
    %c0_12 = arith.constant 0 : index
    %14 = vector.load %arg5[%c0_11, %c0_12] : memref<8x128xf32, #tpu.memory_space<vmem>>, vector<8x128xf32>
    tpu.vector_store %arg5[%c0_11, %c0_12], %13 {strides = array<i32>} : memref<8x128xf32, #tpu.memory_space<vmem>>, vector<8x128xf32>,
    return
  }
  func.func @transform_0(%arg0: i32) -> (i32, i32, i32) {
    %c0_i32 = arith.constant 0 : i32
    %c0_i32_0 = arith.constant 0 : i32
    %c0_i32_1 = arith.constant 0 : i32
    return %arg0, %c0_i32, %c0_i32_0 : i32, i32, i32
  }
  func.func @transform_1(%arg0: i32) -> (i32, i32) {
    %c0_i32 = arith.constant 0 : i32
    %c0_i32_0 = arith.constant 0 : i32
    %c0_i32_1 = arith.constant 0 : i32
    return %c0_i32, %c0_i32_0 : i32, i32
  }
  func.func @transform_2(%arg0: i32) -> (i32, i32) {
    %c0_i32 = arith.constant 0 : i32
    %c0_i32_0 = arith.constant 0 : i32
    %c0_i32_1 = arith.constant 0 : i32
    return %c0_i32, %c0_i32_0 : i32, i32
  }
  func.func @transform_3(%arg0: i32) -> (i32, i32) {
    %c0_i32 = arith.constant 0 : i32
    %c0_i32_0 = arith.constant 0 : i32
    %c0_i32_1 = arith.constant 0 : i32
    return %c0_i32, %c0_i32_0 : i32, i32
  }
  func.func @transform_4(%arg0: i32) -> (i32, i32) {
    %c0_i32 = arith.constant 0 : i32
    %c0_i32_0 = arith.constant 0 : i32
    return %arg0, %c0_i32 : i32, i32
  }
}

</mosaic_0001>

<bundles_post_ra>
// kernel: tpu_custom_call.1
= control target key start
LH: loop header
LB: loop body
LE: loop exit
PB: predicated region body
PF: predicated region fallthrough
CT: control target
= control target key end

     0   :  { %9 = vsyncpa [#allocation4], 0  ;;  %s902_s0 = inlined_call_operand.hbm [shape: f32[2,8,32], index: 0, kind: input, shape index: {}]   ;;  %s903_s1 = inlined_call_operand.hbm [shape: f32[8,32], index: 1, kind: input, shape index: {}]   ;;  %s904_s2 = inlined_call_operand.hbm [shape: f32[8,128], index: 2, kind: input, shape index: {}]   ;;  %s905_s3 = inlined_call_operand.hbm [shape: f32[8,128], index: 3, kind: input, shape index: {}]   ;;  %s906_s4 = inlined_call_operand.hbm [shape: f32[16,128], index: 4, kind: output, shape index: {}]  }
   0x1   :  { %11 = vsyncpa [#allocation4 + $0x1], 0 }
   0x2   :  { %12 = vsyncpa [#allocation7], 0 }
   0x3   :  { %13 = vsyncpa [#allocation10], 0 }
   0x4   :  { %14 = vsyncpa [#allocation5], 0 }
   0x5   :  { %16 = vsyncpa [#allocation5 + $0x1], 0  ;;  %s754_s15 = smov 0   ;;  %s756_s16 = smov 0  }
   0x6   :  { %s758_s17 = smov 0   ;;  %s760_s18 = smov 0  }
   0x7 LB: > { %s775_s19 = sadd.s32 4294967295, %s724_s18   ;;  %s432_s20 = sadd.s32 4294967294, %s724_s18   ;;  %s724_s18 = sphi %s760_s18, %s916_s18   ;;  %s720_s17 = sphi %s758_s17, %s915_s17   ;;  %s716_s16 = sphi %s756_s16, %s914_s16   ;;  %s712_s15 = sphi %s754_s15, %s913_s15  }
   0x8   : > { %p42_p0 = scmp.ne.s32.totalorder %s716_s16, %s712_s15  ;;  %p43_p1 = scmp.eq.s32.totalorder %s775_s19, 0 }
   0x9   : > { %p129_p2 = scmp.eq.s32.totalorder %s775_s19, 1  ;;  %p135_p3 = scmp.eq.s32.totalorder %s432_s20, 1 }
   0xa   : > { %p784_p4 = por %p43_p1, %p42_p0  ;;  %p433_p5 = scmp.ge.s32.totalorder %s724_s18, 1 }
   0xb   : > { %p789_p6 = por %p135_p3, %p42_p0  ;;  %p142_p7 = scmp.lt.s32.totalorder %s724_s18, 3 }
   0xc   : > { %s154_s25 = sshll.u32 %s903_s1, 4  ;;  %s726_s27 = smov [#allocation6]   ;;  %s155_s25 = int_to_ptr.hbm [resolvable:$true] %s154_s25 }
   0xd   : > { %p797_p8 = pnand %p433_p5, %p142_p7  ;;  %s156_s28 = sshll.u32 %s726_s27, 4  ;;  %s157_s28 = int_to_ptr.vmem [resolvable:$true] %s156_s28 }
   0xe   : > { %s166_s5 = sshll.u32 %s904_s2, 4  ;;  %s178_s8 = sshll.u32 %s905_s3, 4  ;;  %s167_s5 = int_to_ptr.hbm [resolvable:$true] %s166_s5  ;;  %s179_s8 = int_to_ptr.hbm [resolvable:$true] %s178_s8 }
   0xf   : > { %p469_p10 = pneg %p797_p8  ;;  %s727_s9 = smov [#allocation8]  }
  0x10   : > { %s168_s10 = sshll.u32 %s727_s9, 4  ;;  %s728_s11 = smov [#allocation9]   ;;  %s169_s10 = int_to_ptr.vmem [resolvable:$true] %s168_s10 }
  0x11   : > { %p470_p11 = pnand %p469_p10, %p43_p1  ;;  %s180_s12 = sshll.u32 %s728_s11, 4  ;;  %s181_s12 = int_to_ptr.vmem [resolvable:$true] %s180_s12 }
  0x12   : > { %s813_s13 = sadd.s32 1, %s724_s18   ;;  %s29_s20 = sadd.s32 1, %s720_s17 }
  0x13   : > { %472 = dma.hbm_to_vmem [thread:$0]  (!%p470_p11), %s155_s25, 128, %s157_s28, [#allocation7]  }
  0x14   : > { %475 = dma.hbm_to_vmem [thread:$0]  (!%p470_p11), %s167_s5, 128, %s169_s10, [#allocation7]  }
  0x15   : > { %478 = dma.hbm_to_vmem [thread:$0]  (!%p470_p11), %s179_s8, 128, %s181_s12, [#allocation10]  }
  0x16   : > { %s26_s14 = ssub.s32 %s724_s18, %s813_s13  ;;  %p36_p13 = scmp.ne.s32.totalorder %s720_s17, %s716_s16 }
  0x17   : > { %p27_p12 = scmp.eq.s32.totalorder %s26_s14, 0  ;;  %p37_p0 = scmp.eq.s32.totalorder %s724_s18, 0 }
  0x18   : > { %p826_p3 = por %p129_p2, %p36_p13  ;;  %p490_p5 = scmp.lt.s32.totalorder %s724_s18, 2 }
  0x19   : > { %s822_s23 = scalar_select %p27_p12, %s720_s17, %s29_s20  }
  0x1a   : > { %s191_s25 = sand.u32 1, %s720_s17   ;;  %s439_s27 = sshll.u32 %s724_s18, 3 }
  0x1b   : > { %p38_p7 = por %p37_p0, %p36_p13  ;;  %s438_s28 = sshll.u32 %s191_s25, 3 }
  0x1c   : > { %s199_s5 = scalar_lea.hbm %s902_s0, %s439_s27  ;;  %s195_s7 = scalar_lea.vmem [#allocation3], %s438_s28 }
  0x1d   : > { %s201_s6 = sshll.u32 %s199_s5, 4  ;;  %s203_s8 = sshll.u32 %s195_s7, 4  ;;  %s202_s6 = int_to_ptr.hbm [resolvable:$true] %s201_s6  ;;  %s204_s8 = int_to_ptr.vmem [resolvable:$true] %s203_s8 }
  0x1e   : > { %p836_p10 = pnand %p490_p5, %p38_p7  ;;  %s192_s10 = scalar_lea.sflag [#allocation4], %s191_s25 }
  0x1f   : > { %s620_s11 = sshra.s32 %s202_s6, 4  ;;  %s627_s27 = scalar_lea.hbm %s902_s0, 16  ;;  %s621_s11 = int_to_ptr.hbm [resolvable:$true] %s620_s11 }
  0x20   : > { %s622_s12 = scalar_lea.hbm %s621_s11, 8  ;;  %p624_p11 = pneg %p836_p10 }
  0x21   : > { %p623_p2 = scmp.ne.s32.totalorder %s621_s11, %s622_s12  ;;  %p628_p0 = scmp.lt.s32.totalorder %s621_s11, %s902_s0 }
  0x22   : > { %p629_p5 = scmp.lt.s32.totalorder %s627_s27, %s622_s12 }
  0x23   : > { %p625_p12 = pnand %p624_p11, %p623_p2 }
  0x24   : > { %p630_p7 = por %p629_p5, %p628_p0 }
  0x25   : > { %p626_p13 = pneg %p625_p12 }
  0x27   : > { %p631_p9 = pnand %p630_p7, %p626_p13 }
  0x29   : > { %634 = shalt.err (!%p631_p9)
}
  0x2a   : > { %482 = dma.hbm_to_vmem [thread:$0]  (!%p836_p10), %s202_s6, 128, %s204_s8, %s192_s10  }
  0x2b   : > { %212 = sbr.rel (%p797_p8) target bundleno = 322 (0x142), region = 36  ;;  %s853_s25 = sand.u32 (!%p797_p8), 1, %s716_s16  }
  0x2c   : > { %s441_s30 = sshll.u32 (!%p797_p8), %s853_s25, 3  ;;  %s215_s5 = scalar_lea.sflag (!%p797_p8), [#allocation4], %s853_s25 }
  0x2d   : > { %s218_s7 = scalar_lea.vmem (!%p797_p8), [#allocation3], %s441_s30 }
  0x30   : > { %695 = dma.done.wait (%p784_p4), %s215_s5, 128  }
  0x31   : > { %697 = vsyncadd (%p784_p4), %s215_s5, 4294967168 }
  0x32   : > { %699 = dma.done.wait (%p43_p1), [#allocation7], 256  }
  0x33   : > { %701 = vsyncadd (%p43_p1), [#allocation7], 4294967040 }
  0x34   : > { %703 = dma.done.wait (%p43_p1), [#allocation10], 128  }
  0x35   : > { %705 = vsyncadd (%p43_p1), [#allocation10], 4294967168  ;;  %vm261_vm0 = vcmask 261120   ;;  %v260_v0 = vld [vmem:[%s218_s7] sm:$0xff]  ;;  %v259_v1 = vld [vmem:[#allocation6] sm:$0xff]  ;;  %vm288_vm1 = vcmask 64512  }
  0x36   : > { %446 = vmatpush.xpose.msk.msra.mxu0 %vm261_vm0, %v260_v0  ;;  %v291_v2 = vld [vmem:[#allocation8] sm:$0xff]  ;;  %s450_s21 = sshll.u32 %s775_s19, 3  ;;  %v292_v5 = vld [vmem:[#allocation9] sm:$0xff]  ;;  %s258_s9 = scalar_lea.vmem [#allocation11], %s441_s30 }
  0x37   : > { %311 = vmatpush.msra.mxu1 %v291_v2  ;;  %s328_s8 = scalar_lea.hbm %s906_s4, %s450_s21  ;;  %s330_s10 = sshll.u32 %s258_s9, 4  ;;  %s331_s10 = int_to_ptr.vmem [resolvable:$true] %s330_s10 }
  0x38   : > { %s332_s11 = sshll.u32 %s328_s8, 4  ;;  %s318_s12 = scalar_lea.sflag [#allocation5], %s853_s25  ;;  %s333_s11 = int_to_ptr.hbm [resolvable:$true] %s332_s11 }
  0x39   : > { %447 = vmatmul.msk.f32.vlgmr.msra.gmra.mxu0 %vm261_vm0, %v259_v1  ;;  %s664_s14 = sshra.s32 %s333_s11, 4  ;;  %s670_s28 = scalar_lea.hbm %s906_s4, 16  ;;  %s665_s14 = int_to_ptr.hbm [resolvable:$true] %s664_s14 }
  0x3a   : > { %s666_s20 = scalar_lea.hbm %s665_s14, 8  ;;  %p671_p9 = scmp.lt.s32.totalorder %s665_s14, %s906_s4 }
  0x3b   : > { %p667_p1 = scmp.ne.s32.totalorder %s665_s14, %s666_s20  ;;  %p672_p10 = scmp.lt.s32.totalorder %s670_s28, %s666_s20 }
  0x3d   : > { %p668_p4 = pnand %p667_p1, %p826_p3  ;;  %p673_p2 = por %p672_p10, %p671_p9 }
  0x3f   : > { %p669_p8 = pneg %p668_p4 }
  0x41   : > { %p674_p11 = pnand %p673_p2, %p669_p8 }
  0xb6   : > { %v285_v3 = vpop.f32.mrf.mxu0 }
  0xb7   : > { %289 = vst.msk [vmem:[#allocation2] sm:$0xff] %vm288_vm1, %v285_v3 }
  0xbe   : > { %v290_v4 = vld [vmem:[#allocation2] sm:$0xff] }
  0xbf   : > { %448 = vmatmul.msk.f32.vlgmr.msra.gmra.mxu1 %vm288_vm1, %v290_v4 }
 0x13c   : > { %v313_v6 = vpop.f32.mrf.mxu1 }
 0x13d   : > { %v314_v7 = vadd.f32 %v313_v6, %v292_v5 }
 0x13f   : > { %316 = vst [vmem:[%s258_s9] sm:$0xff] %v314_v7 }
 0x140   : > { %677 = shalt.err (!%p674_p11)
}
 0x141   : > { %467 = dma.vmem_to_hbm [thread:$0]  (%p826_p3), %s331_s10, 128, %s333_s11, %s318_s12  }
 0x142 PF: > { %s344_s25 = sand.u32 1, %s712_s15   ;;  %p912_p12 = scmp.ge.s32.totalorder %s724_s18, 2 }
 0x143   : > { %s345_s5 = scalar_lea.sflag [#allocation5], %s344_s25 }
 0x144   : > { %p484_p13 = pnand %p912_p12, %p789_p6 }
 0x146   : > { %p485_p0 = pneg %p484_p13 }
 0x148   : > { %707 = dma.done.wait (%p485_p0), %s345_s5, 128  }
 0x149   : > { %709 = vsyncadd (%p485_p0), %s345_s5, 4294967168  ;;  %p19_p5 = scmp.ge.s32.totalorder %s813_s13, 4   ;;  %s913_s15 = smov %s716_s16 }
 0x14a   : > { %s914_s16 = smov %s720_s17  ;;  %s915_s17 = smov %s822_s23 }
 0x14b   : > { %s916_s18 = smov %s813_s13  ;;  %21 = sbr.rel (!%p19_p5) target bundleno = 7 (0x7), region = 93 }
 0x150   :  { %351 = vsyncpa [#allocation4], 1 }
 0x151   :  { %353 = vsyncpa [#allocation4 + $0x1], 1 }
 0x152   :  { %354 = vsyncpa [#allocation7], 1 }
 0x153   :  { %355 = vsyncpa [#allocation10], 1 }
 0x154   :  { %356 = vsyncpa [#allocation5], 1 }
 0x155   :  { %358 = vsyncpa [#allocation5 + $0x1], 1 }

</bundles_post_ra>
